<compile_context>
chip_gen: v5e
topology: v5e:2x2
jax: 0.10.0
libtpu: 0.0.40
codegen_flags: <defaults>
</compile_context>

<pallas_src>
import functools

import jax
import jax.numpy as jnp
import numpy as np
from jax import lax
from jax.experimental import pallas as pl
from jax.experimental.pallas import tpu as pltpu


# ----------------------------- Pallas kernel --------------------------------
def _make_rnn_kernel(seq_len, future, batch, hidden):
    """seq_len observed steps + `future` autoregressive steps, fully unrolled
    inside one kernel invocation (total trip count is small and static)."""
    t_total = seq_len + future

    def kernel(x_ref, wih_ref, bias_ref, wout_ref, whh_ref, wfut_ref,
               bfut_ref, blin_ref, o_ref):
        # ---- hoisted loop invariants (JAX does not CSE broadcast_in_dim) ----
        w_ih_b = jnp.broadcast_to(wih_ref[...], (batch, hidden))    # (B,H) f32
        bias_b = jnp.broadcast_to(bias_ref[...], (batch, hidden))   # (B,H) f32
        w_out_b = jnp.broadcast_to(wout_ref[...], (batch, hidden))  # (B,H) f32
        bfut_b = jnp.broadcast_to(bfut_ref[...], (batch, hidden))   # (B,H) f32
        w_hh = whh_ref[...]                                         # (H,H) bf16
        w_fut = wfut_ref[...]                                       # (H,H) bf16
        b_lin = blin_ref[0]                                         # SMEM scalar
        lane_t = lax.broadcasted_iota(jnp.int32, (1, t_total), 1)   # (1, Tt)
        x_all = x_ref[...]                                          # (B, T) f32

        def project(h):
            # Linear(H, 1) on VPU/XLU (multiply + lane reduce): keeps the MXU
            # for the recurrence and sits off the serial dependency chain
            # (slack filler under the MXU/tanh latency).
            return jnp.sum(h * w_out_b, axis=-1, keepdims=True) + b_lin  # (B,1)

        def recur(h_f32, w_bf16, bias_full):
            # bf16 operands -> guaranteed single-pass MXU matmul on all gens;
            # f32 accumulate, f32 tanh/bias (v5e VPU/EUP has no bf16 path).
            hh = jnp.dot(h_f32.astype(jnp.bfloat16), w_bf16,
                         preferred_element_type=jnp.float32)
            return jnp.tanh(hh + bias_full)

        h = jnp.zeros((batch, hidden), jnp.float32)
        slab = jnp.zeros((batch, t_total), jnp.float32)   # lane-dense output acc

        # ---- observed phase: input_t = x[:, t] -------------------------------
        for t in range(seq_len):
            inp = x_all[:, t:t + 1]                                  # (B, 1)
            h = recur(h, w_hh, inp * w_ih_b + bias_b)
            slab = slab + jnp.where(lane_t == t, project(h), 0.0)

        # ---- future phase: Linear folded into the recurrence -----------------
        for t in range(seq_len, t_total):
            h = recur(h, w_fut, bfut_b)
            slab = slab + jnp.where(lane_t == t, project(h), 0.0)

        o_ref[...] = slab                                            # one store

    return kernel


# ---------------------- one-time parameter preparation -----------------------
def prepare_params(params):
    """Fold weights into kernel-ready layouts ONCE (not per forward call)."""
    H = params["w_hh"].shape[0]
    w_ih_row = params["w_ih"].reshape(1, H).astype(jnp.float32)            # (1,H)
    bias = (params["b_ih"] + params["b_hh"]).reshape(1, H).astype(jnp.float32)
    w_out_row = params["w_lin"].reshape(1, H).astype(jnp.float32)          # (1,H)
    b_lin = params["b_lin"].reshape(1).astype(jnp.float32)                 # (1,)
    w_hh_t = params["w_hh"].T.astype(jnp.float32)                          # (H,H)
    # Fold Linear into the autoregressive recurrence:
    #   h' = tanh(h @ (W_hh^T + w_lin^T w_ih^T) + (b + b_lin * w_ih^T))
    w_fut = w_hh_t + jnp.outer(params["w_lin"].reshape(H),
                               params["w_ih"].reshape(H)).astype(jnp.float32)
    b_fut = bias + b_lin[0] * w_ih_row                                     # (1,H)
    return {
        "w_ih_row": w_ih_row,
        "bias": bias,
        "w_out_row": w_out_row,
        "b_lin": b_lin,
        "w_hh_t_bf16": w_hh_t.astype(jnp.bfloat16),                        # MXU RHS
        "w_fut_bf16": w_fut.astype(jnp.bfloat16),                          # MXU RHS
        "b_fut": b_fut,
    }


# ------------------------------ jitted forward --------------------------------
@functools.partial(jax.jit, static_argnames=("future",))
def rnn_predictor_forward(x, prepped, future=0):
    """x: (B, T) float32 -> (B, T + future) float32 (matches torch forward)."""
    x = x.astype(jnp.float32)
    B, T = x.shape
    H = prepped["w_hh_t_bf16"].shape[0]
    T_total = T + future

    kernel = _make_rnn_kernel(T, future, B, H)

    out = pl.pallas_call(
        kernel,
        out_shape=jax.ShapeDtypeStruct((B, T_total), jnp.float32),
        grid_spec=pltpu.PrefetchScalarGridSpec(
            num_scalar_prefetch=0,
            grid=(1,),                                  # single resident invocation
            in_specs=[
                pl.BlockSpec((B, T), lambda i: (0, 0)),         # x (B, T)
                pl.BlockSpec((1, H), lambda i: (0, 0)),         # W_ih row (f32)
                pl.BlockSpec((1, H), lambda i: (0, 0)),         # b_ih + b_hh (f32)
                pl.BlockSpec((1, H), lambda i: (0, 0)),         # w_lin row (f32)
                pl.BlockSpec((H, H), lambda i: (0, 0)),         # W_hh^T (bf16)
                pl.BlockSpec((H, H), lambda i: (0, 0)),         # W_fut folded (bf16)
                pl.BlockSpec((1, H), lambda i: (0, 0)),         # b_fut (f32)
                pl.BlockSpec(memory_space=pltpu.MemorySpace.SMEM),  # b_lin scalar
            ],
            out_specs=pl.BlockSpec((B, T_total), lambda i: (0, 0)),
        ),
        compiler_params=pltpu.CompilerParams(
            dimension_semantics=("arbitrary",),
        ),
    )(x, prepped["w_ih_row"], prepped["bias"], prepped["w_out_row"],
      prepped["w_hh_t_bf16"], prepped["w_fut_bf16"], prepped["b_fut"],
      prepped["b_lin"])

    return out                                                   # (B, T_total)


# --------------------------- parameters / reference --------------------------
def init_params(key, n_hidden):
    ks = jax.random.split(key, 6)
    s = 1.0 / np.sqrt(n_hidden)
    u = lambda k, shape: jax.random.uniform(k, shape, jnp.float32, -s, s)
    return {
        "w_ih": u(ks[0], (n_hidden, 1)),          # RNNCell.weight_ih
        "w_hh": u(ks[1], (n_hidden, n_hidden)),   # RNNCell.weight_hh
        "b_ih": u(ks[2], (n_hidden,)),            # RNNCell.bias_ih
        "b_hh": u(ks[3], (n_hidden,)),            # RNNCell.bias_hh
        "w_lin": u(ks[4], (1, n_hidden)),         # Linear.weight
        "b_lin": u(ks[5], (1,)),                  # Linear.bias
    }


def reference_forward(x, p, future=0):
    B, T = x.shape
    H = p["w_hh"].shape[0]
    h = jnp.zeros((B, H), jnp.float32)
    outs = []
    out = None
    for t in range(T):
        xt = x[:, t:t + 1]
        h = jnp.tanh(xt @ p["w_ih"].T + p["b_ih"] + h @ p["w_hh"].T + p["b_hh"])
        out = h @ p["w_lin"].T + p["b_lin"]
        outs.append(out)
    for _ in range(future):
        h = jnp.tanh(out @ p["w_ih"].T + p["b_ih"] + h @ p["w_hh"].T + p["b_hh"])
        out = h @ p["w_lin"].T + p["b_lin"]
        outs.append(out)
    return jnp.concatenate(outs, axis=1)


# ----------------------------------- main ------------------------------------
if __name__ == "__main__":
    B, T, H, FUTURE = 8, 8, 128, 4

    key = jax.random.PRNGKey(0)
    k_x, k_p = jax.random.split(key)
    x = jax.random.normal(k_x, (B, T), jnp.float32)
    params = init_params(k_p, H)

    prepped = prepare_params(params)                 # one-time folding
    prepped = jax.block_until_ready(prepped)

    out = rnn_predictor_forward(x, prepped, future=FUTURE)
    out = jax.block_until_ready(out)

    ref = jax.block_until_ready(reference_forward(x, params, future=FUTURE))

    assert out.shape == (B, T + FUTURE), out.shape
    np.testing.assert_allclose(np.asarray(out), np.asarray(ref),
                               rtol=1.5e-2, atol=1e-2)

    print("KERNEL_OK")
</pallas_src>

<mosaic_0001>
module attributes {stable_mosaic.version = 11 : i64} {
  func.func @kernel(%arg0: i32, %arg1: memref<8x8xf32, #tpu.memory_space<vmem>>, %arg2: memref<1x128xf32, #tpu.memory_space<vmem>>, %arg3: memref<1x128xf32, #tpu.memory_space<vmem>>, %arg4: memref<1x128xf32, #tpu.memory_space<vmem>>, %arg5: memref<128x128xbf16, #tpu.memory_space<vmem>>, %arg6: memref<128x128xbf16, #tpu.memory_space<vmem>>, %arg7: memref<1x128xf32, #tpu.memory_space<vmem>>, %arg8: memref<1xf32, #tpu.memory_space<smem>>, %arg9: memref<8x12xf32, #tpu.memory_space<vmem>>) attributes {dimension_semantics = [#tpu.dimension_semantics<arbitrary>], iteration_bounds = array<i64: 1>, scalar_prefetch = 0 : i64, scratch_operands = 0 : i64, tpu.core_type = #tpu.core_type<tc>, window_params = [{pipeline_mode = #tpu.pipeline_mode<synchronous>, transform_indices = @transform_0, window_bounds = array<i64: 8, 8>}, {pipeline_mode = #tpu.pipeline_mode<synchronous>, transform_indices = @transform_1, window_bounds = array<i64: 1, 128>}, {pipeline_mode = #tpu.pipeline_mode<synchronous>, transform_indices = @transform_2, window_bounds = array<i64: 1, 128>}, {pipeline_mode = #tpu.pipeline_mode<synchronous>, transform_indices = @transform_3, window_bounds = array<i64: 1, 128>}, {pipeline_mode = #tpu.pipeline_mode<synchronous>, transform_indices = @transform_4, window_bounds = array<i64: 128, 128>}, {pipeline_mode = #tpu.pipeline_mode<synchronous>, transform_indices = @transform_5, window_bounds = array<i64: 128, 128>}, {pipeline_mode = #tpu.pipeline_mode<synchronous>, transform_indices = @transform_6, window_bounds = array<i64: 1, 128>}, {transform_indices = @transform_7, window_bounds = array<i64: 1>}, {pipeline_mode = #tpu.pipeline_mode<synchronous>, transform_indices = @transform_8, window_bounds = array<i64: 8, 12>}]} {
    %c0 = arith.constant 0 : index
    %c0_0 = arith.constant 0 : index
    %0 = vector.load %arg2[%c0, %c0_0] : memref<1x128xf32, #tpu.memory_space<vmem>>, vector<1x128xf32>
    %1 = vector.shape_cast %0 : vector<1x128xf32> to vector<1x128xf32>
    %2 = vector.broadcast %1 : vector<1x128xf32> to vector<8x128xf32>
    %c0_1 = arith.constant 0 : index
    %c0_2 = arith.constant 0 : index
    %3 = vector.load %arg3[%c0_1, %c0_2] : memref<1x128xf32, #tpu.memory_space<vmem>>, vector<1x128xf32>
    %4 = vector.shape_cast %3 : vector<1x128xf32> to vector<1x128xf32>
    %5 = vector.broadcast %4 : vector<1x128xf32> to vector<8x128xf32>
    %c0_3 = arith.constant 0 : index
    %c0_4 = arith.constant 0 : index
    %6 = vector.load %arg4[%c0_3, %c0_4] : memref<1x128xf32, #tpu.memory_space<vmem>>, vector<1x128xf32>
    %7 = vector.shape_cast %6 : vector<1x128xf32> to vector<1x128xf32>
    %8 = vector.broadcast %7 : vector<1x128xf32> to vector<8x128xf32>
    %c0_5 = arith.constant 0 : index
    %c0_6 = arith.constant 0 : index
    %9 = vector.load %arg7[%c0_5, %c0_6] : memref<1x128xf32, #tpu.memory_space<vmem>>, vector<1x128xf32>
    %10 = vector.shape_cast %9 : vector<1x128xf32> to vector<1x128xf32>
    %11 = vector.broadcast %10 : vector<1x128xf32> to vector<8x128xf32>
    %c0_7 = arith.constant 0 : index
    %c0_8 = arith.constant 0 : index
    %12 = vector.load %arg5[%c0_7, %c0_8] : memref<128x128xbf16, #tpu.memory_space<vmem>>, vector<128x128xbf16>
    %c0_9 = arith.constant 0 : index
    %c0_10 = arith.constant 0 : index
    %13 = vector.load %arg6[%c0_9, %c0_10] : memref<128x128xbf16, #tpu.memory_space<vmem>>, vector<128x128xbf16>
    %c0_11 = arith.constant 0 : index
    %14 = memref.load %arg8[%c0_11] : memref<1xf32, #tpu.memory_space<smem>>
    %15 = tpu.iota {dimensions = array<i32: 1>} : vector<1x12xi32>
    %c0_12 = arith.constant 0 : index
    %c0_13 = arith.constant 0 : index
    %16 = vector.load %arg1[%c0_12, %c0_13] : memref<8x8xf32, #tpu.memory_space<vmem>>, vector<8x8xf32>
    %cst = arith.constant 0.000000e+00 : f32
    %17 = vector.broadcast %cst : f32 to vector<8x128xf32>
    %cst_14 = arith.constant 0.000000e+00 : f32
    %18 = vector.broadcast %cst_14 : f32 to vector<8x12xf32>
    %19 = vector.extract_strided_slice %16 {offsets = [0, 0], sizes = [8, 1], strides = [1, 1]} : vector<8x8xf32> to vector<8x1xf32>
    %20 = vector.broadcast %19 : vector<8x1xf32> to vector<8x128xf32>
    %21 = arith.mulf %20, %2 : vector<8x128xf32>
    %22 = arith.addf %21, %5 : vector<8x128xf32>
    %23 = arith.truncf %17 : vector<8x128xf32> to vector<8x128xbf16>
    %cst_15 = arith.constant dense<0.000000e+00> : vector<8x128xf32>
    %24 = tpu.matmul %23, %12, %cst_15 {dimension_numbers = #tpu.dot_dimension_numbers<[1], [0], [0], [1], [0, 0, 1, 1], [], []>} : vector<8x128xbf16>, vector<128x128xbf16>, vector<8x128xf32> -> vector<8x128xf32>
    %25 = arith.addf %24, %22 : vector<8x128xf32>
    %26 = math.tanh %25 : vector<8x128xf32>
    %c0_i32 = arith.constant 0 : i32
    %27 = vector.broadcast %c0_i32 : i32 to vector<1x12xi32>
    %28 = arith.cmpi eq, %15, %27 : vector<1x12xi32>
    %29 = arith.mulf %26, %8 : vector<8x128xf32>
    %cst_16 = arith.constant dense<0.000000e+00> : vector<8xf32>
    %30 = vector.multi_reduction <add>, %29, %cst_16 [1] : vector<8x128xf32> to vector<8xf32>
    %31 = vector.shape_cast %30 : vector<8xf32> to vector<8x1xf32>
    %32 = vector.broadcast %14 : f32 to vector<8x1xf32>
    %33 = arith.addf %31, %32 : vector<8x1xf32>
    %cst_17 = arith.constant 0.000000e+00 : f32
    %34 = vector.shape_cast %28 : vector<1x12xi1> to vector<1x12xi1>
    %35 = vector.broadcast %34 : vector<1x12xi1> to vector<8x12xi1>
    %36 = vector.shape_cast %33 : vector<8x1xf32> to vector<8x1xf32>
    %37 = vector.broadcast %36 : vector<8x1xf32> to vector<8x12xf32>
    %38 = vector.broadcast %cst_17 : f32 to vector<8x12xf32>
    %39 = arith.select %35, %37, %38 : vector<8x12xi1>, vector<8x12xf32>
    %40 = arith.addf %18, %39 : vector<8x12xf32>
    %41 = vector.extract_strided_slice %16 {offsets = [0, 1], sizes = [8, 1], strides = [1, 1]} : vector<8x8xf32> to vector<8x1xf32>
    %42 = vector.broadcast %41 : vector<8x1xf32> to vector<8x128xf32>
    %43 = arith.mulf %42, %2 : vector<8x128xf32>
    %44 = arith.addf %43, %5 : vector<8x128xf32>
    %45 = arith.truncf %26 : vector<8x128xf32> to vector<8x128xbf16>
    %cst_18 = arith.constant dense<0.000000e+00> : vector<8x128xf32>
    %46 = tpu.matmul %45, %12, %cst_18 {dimension_numbers = #tpu.dot_dimension_numbers<[1], [0], [0], [1], [0, 0, 1, 1], [], []>} : vector<8x128xbf16>, vector<128x128xbf16>, vector<8x128xf32> -> vector<8x128xf32>
    %47 = arith.addf %46, %44 : vector<8x128xf32>
    %48 = math.tanh %47 : vector<8x128xf32>
    %c1_i32 = arith.constant 1 : i32
    %49 = vector.broadcast %c1_i32 : i32 to vector<1x12xi32>
    %50 = arith.cmpi eq, %15, %49 : vector<1x12xi32>
    %51 = arith.mulf %48, %8 : vector<8x128xf32>
    %cst_19 = arith.constant dense<0.000000e+00> : vector<8xf32>
    %52 = vector.multi_reduction <add>, %51, %cst_19 [1] : vector<8x128xf32> to vector<8xf32>
    %53 = vector.shape_cast %52 : vector<8xf32> to vector<8x1xf32>
    %54 = vector.broadcast %14 : f32 to vector<8x1xf32>
    %55 = arith.addf %53, %54 : vector<8x1xf32>
    %cst_20 = arith.constant 0.000000e+00 : f32
    %56 = vector.shape_cast %50 : vector<1x12xi1> to vector<1x12xi1>
    %57 = vector.broadcast %56 : vector<1x12xi1> to vector<8x12xi1>
    %58 = vector.shape_cast %55 : vector<8x1xf32> to vector<8x1xf32>
    %59 = vector.broadcast %58 : vector<8x1xf32> to vector<8x12xf32>
    %60 = vector.broadcast %cst_20 : f32 to vector<8x12xf32>
    %61 = arith.select %57, %59, %60 : vector<8x12xi1>, vector<8x12xf32>
    %62 = arith.addf %40, %61 : vector<8x12xf32>
    %63 = vector.extract_strided_slice %16 {offsets = [0, 2], sizes = [8, 1], strides = [1, 1]} : vector<8x8xf32> to vector<8x1xf32>
    %64 = vector.broadcast %63 : vector<8x1xf32> to vector<8x128xf32>
    %65 = arith.mulf %64, %2 : vector<8x128xf32>
    %66 = arith.addf %65, %5 : vector<8x128xf32>
    %67 = arith.truncf %48 : vector<8x128xf32> to vector<8x128xbf16>
    %cst_21 = arith.constant dense<0.000000e+00> : vector<8x128xf32>
    %68 = tpu.matmul %67, %12, %cst_21 {dimension_numbers = #tpu.dot_dimension_numbers<[1], [0], [0], [1], [0, 0, 1, 1], [], []>} : vector<8x128xbf16>, vector<128x128xbf16>, vector<8x128xf32> -> vector<8x128xf32>
    %69 = arith.addf %68, %66 : vector<8x128xf32>
    %70 = math.tanh %69 : vector<8x128xf32>
    %c2_i32 = arith.constant 2 : i32
    %71 = vector.broadcast %c2_i32 : i32 to vector<1x12xi32>
    %72 = arith.cmpi eq, %15, %71 : vector<1x12xi32>
    %73 = arith.mulf %70, %8 : vector<8x128xf32>
    %cst_22 = arith.constant dense<0.000000e+00> : vector<8xf32>
    %74 = vector.multi_reduction <add>, %73, %cst_22 [1] : vector<8x128xf32> to vector<8xf32>
    %75 = vector.shape_cast %74 : vector<8xf32> to vector<8x1xf32>
    %76 = vector.broadcast %14 : f32 to vector<8x1xf32>
    %77 = arith.addf %75, %76 : vector<8x1xf32>
    %cst_23 = arith.constant 0.000000e+00 : f32
    %78 = vector.shape_cast %72 : vector<1x12xi1> to vector<1x12xi1>
    %79 = vector.broadcast %78 : vector<1x12xi1> to vector<8x12xi1>
    %80 = vector.shape_cast %77 : vector<8x1xf32> to vector<8x1xf32>
    %81 = vector.broadcast %80 : vector<8x1xf32> to vector<8x12xf32>
    %82 = vector.broadcast %cst_23 : f32 to vector<8x12xf32>
    %83 = arith.select %79, %81, %82 : vector<8x12xi1>, vector<8x12xf32>
    %84 = arith.addf %62, %83 : vector<8x12xf32>
    %85 = vector.extract_strided_slice %16 {offsets = [0, 3], sizes = [8, 1], strides = [1, 1]} : vector<8x8xf32> to vector<8x1xf32>
    %86 = vector.broadcast %85 : vector<8x1xf32> to vector<8x128xf32>
    %87 = arith.mulf %86, %2 : vector<8x128xf32>
    %88 = arith.addf %87, %5 : vector<8x128xf32>
    %89 = arith.truncf %70 : vector<8x128xf32> to vector<8x128xbf16>
    %cst_24 = arith.constant dense<0.000000e+00> : vector<8x128xf32>
    %90 = tpu.matmul %89, %12, %cst_24 {dimension_numbers = #tpu.dot_dimension_numbers<[1], [0], [0], [1], [0, 0, 1, 1], [], []>} : vector<8x128xbf16>, vector<128x128xbf16>, vector<8x128xf32> -> vector<8x128xf32>
    %91 = arith.addf %90, %88 : vector<8x128xf32>
    %92 = math.tanh %91 : vector<8x128xf32>
    %c3_i32 = arith.constant 3 : i32
    %93 = vector.broadcast %c3_i32 : i32 to vector<1x12xi32>
    %94 = arith.cmpi eq, %15, %93 : vector<1x12xi32>
    %95 = arith.mulf %92, %8 : vector<8x128xf32>
    %cst_25 = arith.constant dense<0.000000e+00> : vector<8xf32>
    %96 = vector.multi_reduction <add>, %95, %cst_25 [1] : vector<8x128xf32> to vector<8xf32>
    %97 = vector.shape_cast %96 : vector<8xf32> to vector<8x1xf32>
    %98 = vector.broadcast %14 : f32 to vector<8x1xf32>
    %99 = arith.addf %97, %98 : vector<8x1xf32>
    %cst_26 = arith.constant 0.000000e+00 : f32
    %100 = vector.shape_cast %94 : vector<1x12xi1> to vector<1x12xi1>
    %101 = vector.broadcast %100 : vector<1x12xi1> to vector<8x12xi1>
    %102 = vector.shape_cast %99 : vector<8x1xf32> to vector<8x1xf32>
    %103 = vector.broadcast %102 : vector<8x1xf32> to vector<8x12xf32>
    %104 = vector.broadcast %cst_26 : f32 to vector<8x12xf32>
    %105 = arith.select %101, %103, %104 : vector<8x12xi1>, vector<8x12xf32>
    %106 = arith.addf %84, %105 : vector<8x12xf32>
    %107 = vector.extract_strided_slice %16 {offsets = [0, 4], sizes = [8, 1], strides = [1, 1]} : vector<8x8xf32> to vector<8x1xf32>
    %108 = vector.broadcast %107 : vector<8x1xf32> to vector<8x128xf32>
    %109 = arith.mulf %108, %2 : vector<8x128xf32>
    %110 = arith.addf %109, %5 : vector<8x128xf32>
    %111 = arith.truncf %92 : vector<8x128xf32> to vector<8x128xbf16>
    %cst_27 = arith.constant dense<0.000000e+00> : vector<8x128xf32>
    %112 = tpu.matmul %111, %12, %cst_27 {dimension_numbers = #tpu.dot_dimension_numbers<[1], [0], [0], [1], [0, 0, 1, 1], [], []>} : vector<8x128xbf16>, vector<128x128xbf16>, vector<8x128xf32> -> vector<8x128xf32>
    %113 = arith.addf %112, %110 : vector<8x128xf32>
    %114 = math.tanh %113 : vector<8x128xf32>
    %c4_i32 = arith.constant 4 : i32
    %115 = vector.broadcast %c4_i32 : i32 to vector<1x12xi32>
    %116 = arith.cmpi eq, %15, %115 : vector<1x12xi32>
    %117 = arith.mulf %114, %8 : vector<8x128xf32>
    %cst_28 = arith.constant dense<0.000000e+00> : vector<8xf32>
    %118 = vector.multi_reduction <add>, %117, %cst_28 [1] : vector<8x128xf32> to vector<8xf32>
    %119 = vector.shape_cast %118 : vector<8xf32> to vector<8x1xf32>
    %120 = vector.broadcast %14 : f32 to vector<8x1xf32>
    %121 = arith.addf %119, %120 : vector<8x1xf32>
    %cst_29 = arith.constant 0.000000e+00 : f32
    %122 = vector.shape_cast %116 : vector<1x12xi1> to vector<1x12xi1>
    %123 = vector.broadcast %122 : vector<1x12xi1> to vector<8x12xi1>
    %124 = vector.shape_cast %121 : vector<8x1xf32> to vector<8x1xf32>
    %125 = vector.broadcast %124 : vector<8x1xf32> to vector<8x12xf32>
    %126 = vector.broadcast %cst_29 : f32 to vector<8x12xf32>
    %127 = arith.select %123, %125, %126 : vector<8x12xi1>, vector<8x12xf32>
    %128 = arith.addf %106, %127 : vector<8x12xf32>
    %129 = vector.extract_strided_slice %16 {offsets = [0, 5], sizes = [8, 1], strides = [1, 1]} : vector<8x8xf32> to vector<8x1xf32>
    %130 = vector.broadcast %129 : vector<8x1xf32> to vector<8x128xf32>
    %131 = arith.mulf %130, %2 : vector<8x128xf32>
    %132 = arith.addf %131, %5 : vector<8x128xf32>
    %133 = arith.truncf %114 : vector<8x128xf32> to vector<8x128xbf16>
    %cst_30 = arith.constant dense<0.000000e+00> : vector<8x128xf32>
    %134 = tpu.matmul %133, %12, %cst_30 {dimension_numbers = #tpu.dot_dimension_numbers<[1], [0], [0], [1], [0, 0, 1, 1], [], []>} : vector<8x128xbf16>, vector<128x128xbf16>, vector<8x128xf32> -> vector<8x128xf32>
    %135 = arith.addf %134, %132 : vector<8x128xf32>
    %136 = math.tanh %135 : vector<8x128xf32>
    %c5_i32 = arith.constant 5 : i32
    %137 = vector.broadcast %c5_i32 : i32 to vector<1x12xi32>
    %138 = arith.cmpi eq, %15, %137 : vector<1x12xi32>
    %139 = arith.mulf %136, %8 : vector<8x128xf32>
    %cst_31 = arith.constant dense<0.000000e+00> : vector<8xf32>
    %140 = vector.multi_reduction <add>, %139, %cst_31 [1] : vector<8x128xf32> to vector<8xf32>
    %141 = vector.shape_cast %140 : vector<8xf32> to vector<8x1xf32>
    %142 = vector.broadcast %14 : f32 to vector<8x1xf32>
    %143 = arith.addf %141, %142 : vector<8x1xf32>
    %cst_32 = arith.constant 0.000000e+00 : f32
    %144 = vector.shape_cast %138 : vector<1x12xi1> to vector<1x12xi1>
    %145 = vector.broadcast %144 : vector<1x12xi1> to vector<8x12xi1>
    %146 = vector.shape_cast %143 : vector<8x1xf32> to vector<8x1xf32>
    %147 = vector.broadcast %146 : vector<8x1xf32> to vector<8x12xf32>
    %148 = vector.broadcast %cst_32 : f32 to vector<8x12xf32>
    %149 = arith.select %145, %147, %148 : vector<8x12xi1>, vector<8x12xf32>
    %150 = arith.addf %128, %149 : vector<8x12xf32>
    %151 = vector.extract_strided_slice %16 {offsets = [0, 6], sizes = [8, 1], strides = [1, 1]} : vector<8x8xf32> to vector<8x1xf32>
    %152 = vector.broadcast %151 : vector<8x1xf32> to vector<8x128xf32>
    %153 = arith.mulf %152, %2 : vector<8x128xf32>
    %154 = arith.addf %153, %5 : vector<8x128xf32>
    %155 = arith.truncf %136 : vector<8x128xf32> to vector<8x128xbf16>
    %cst_33 = arith.constant dense<0.000000e+00> : vector<8x128xf32>
    %156 = tpu.matmul %155, %12, %cst_33 {dimension_numbers = #tpu.dot_dimension_numbers<[1], [0], [0], [1], [0, 0, 1, 1], [], []>} : vector<8x128xbf16>, vector<128x128xbf16>, vector<8x128xf32> -> vector<8x128xf32>
    %157 = arith.addf %156, %154 : vector<8x128xf32>
    %158 = math.tanh %157 : vector<8x128xf32>
    %c6_i32 = arith.constant 6 : i32
    %159 = vector.broadcast %c6_i32 : i32 to vector<1x12xi32>
    %160 = arith.cmpi eq, %15, %159 : vector<1x12xi32>
    %161 = arith.mulf %158, %8 : vector<8x128xf32>
    %cst_34 = arith.constant dense<0.000000e+00> : vector<8xf32>
    %162 = vector.multi_reduction <add>, %161, %cst_34 [1] : vector<8x128xf32> to vector<8xf32>
    %163 = vector.shape_cast %162 : vector<8xf32> to vector<8x1xf32>
    %164 = vector.broadcast %14 : f32 to vector<8x1xf32>
    %165 = arith.addf %163, %164 : vector<8x1xf32>
    %cst_35 = arith.constant 0.000000e+00 : f32
    %166 = vector.shape_cast %160 : vector<1x12xi1> to vector<1x12xi1>
    %167 = vector.broadcast %166 : vector<1x12xi1> to vector<8x12xi1>
    %168 = vector.shape_cast %165 : vector<8x1xf32> to vector<8x1xf32>
    %169 = vector.broadcast %168 : vector<8x1xf32> to vector<8x12xf32>
    %170 = vector.broadcast %cst_35 : f32 to vector<8x12xf32>
    %171 = arith.select %167, %169, %170 : vector<8x12xi1>, vector<8x12xf32>
    %172 = arith.addf %150, %171 : vector<8x12xf32>
    %173 = vector.extract_strided_slice %16 {offsets = [0, 7], sizes = [8, 1], strides = [1, 1]} : vector<8x8xf32> to vector<8x1xf32>
    %174 = vector.broadcast %173 : vector<8x1xf32> to vector<8x128xf32>
    %175 = arith.mulf %174, %2 : vector<8x128xf32>
    %176 = arith.addf %175, %5 : vector<8x128xf32>
    %177 = arith.truncf %158 : vector<8x128xf32> to vector<8x128xbf16>
    %cst_36 = arith.constant dense<0.000000e+00> : vector<8x128xf32>
    %178 = tpu.matmul %177, %12, %cst_36 {dimension_numbers = #tpu.dot_dimension_numbers<[1], [0], [0], [1], [0, 0, 1, 1], [], []>} : vector<8x128xbf16>, vector<128x128xbf16>, vector<8x128xf32> -> vector<8x128xf32>
    %179 = arith.addf %178, %176 : vector<8x128xf32>
    %180 = math.tanh %179 : vector<8x128xf32>
    %c7_i32 = arith.constant 7 : i32
    %181 = vector.broadcast %c7_i32 : i32 to vector<1x12xi32>
    %182 = arith.cmpi eq, %15, %181 : vector<1x12xi32>
    %183 = arith.mulf %180, %8 : vector<8x128xf32>
    %cst_37 = arith.constant dense<0.000000e+00> : vector<8xf32>
    %184 = vector.multi_reduction <add>, %183, %cst_37 [1] : vector<8x128xf32> to vector<8xf32>
    %185 = vector.shape_cast %184 : vector<8xf32> to vector<8x1xf32>
    %186 = vector.broadcast %14 : f32 to vector<8x1xf32>
    %187 = arith.addf %185, %186 : vector<8x1xf32>
    %cst_38 = arith.constant 0.000000e+00 : f32
    %188 = vector.shape_cast %182 : vector<1x12xi1> to vector<1x12xi1>
    %189 = vector.broadcast %188 : vector<1x12xi1> to vector<8x12xi1>
    %190 = vector.shape_cast %187 : vector<8x1xf32> to vector<8x1xf32>
    %191 = vector.broadcast %190 : vector<8x1xf32> to vector<8x12xf32>
    %192 = vector.broadcast %cst_38 : f32 to vector<8x12xf32>
    %193 = arith.select %189, %191, %192 : vector<8x12xi1>, vector<8x12xf32>
    %194 = arith.addf %172, %193 : vector<8x12xf32>
    %195 = arith.truncf %180 : vector<8x128xf32> to vector<8x128xbf16>
    %cst_39 = arith.constant dense<0.000000e+00> : vector<8x128xf32>
    %196 = tpu.matmul %195, %13, %cst_39 {dimension_numbers = #tpu.dot_dimension_numbers<[1], [0], [0], [1], [0, 0, 1, 1], [], []>} : vector<8x128xbf16>, vector<128x128xbf16>, vector<8x128xf32> -> vector<8x128xf32>
    %197 = arith.addf %196, %11 : vector<8x128xf32>
    %198 = math.tanh %197 : vector<8x128xf32>
    %c8_i32 = arith.constant 8 : i32
    %199 = vector.broadcast %c8_i32 : i32 to vector<1x12xi32>
    %200 = arith.cmpi eq, %15, %199 : vector<1x12xi32>
    %201 = arith.mulf %198, %8 : vector<8x128xf32>
    %cst_40 = arith.constant dense<0.000000e+00> : vector<8xf32>
    %202 = vector.multi_reduction <add>, %201, %cst_40 [1] : vector<8x128xf32> to vector<8xf32>
    %203 = vector.shape_cast %202 : vector<8xf32> to vector<8x1xf32>
    %204 = vector.broadcast %14 : f32 to vector<8x1xf32>
    %205 = arith.addf %203, %204 : vector<8x1xf32>
    %cst_41 = arith.constant 0.000000e+00 : f32
    %206 = vector.shape_cast %200 : vector<1x12xi1> to vector<1x12xi1>
    %207 = vector.broadcast %206 : vector<1x12xi1> to vector<8x12xi1>
    %208 = vector.shape_cast %205 : vector<8x1xf32> to vector<8x1xf32>
    %209 = vector.broadcast %208 : vector<8x1xf32> to vector<8x12xf32>
    %210 = vector.broadcast %cst_41 : f32 to vector<8x12xf32>
    %211 = arith.select %207, %209, %210 : vector<8x12xi1>, vector<8x12xf32>
    %212 = arith.addf %194, %211 : vector<8x12xf32>
    %213 = arith.truncf %198 : vector<8x128xf32> to vector<8x128xbf16>
    %cst_42 = arith.constant dense<0.000000e+00> : vector<8x128xf32>
    %214 = tpu.matmul %213, %13, %cst_42 {dimension_numbers = #tpu.dot_dimension_numbers<[1], [0], [0], [1], [0, 0, 1, 1], [], []>} : vector<8x128xbf16>, vector<128x128xbf16>, vector<8x128xf32> -> vector<8x128xf32>
    %215 = arith.addf %214, %11 : vector<8x128xf32>
    %216 = math.tanh %215 : vector<8x128xf32>
    %c9_i32 = arith.constant 9 : i32
    %217 = vector.broadcast %c9_i32 : i32 to vector<1x12xi32>
    %218 = arith.cmpi eq, %15, %217 : vector<1x12xi32>
    %219 = arith.mulf %216, %8 : vector<8x128xf32>
    %cst_43 = arith.constant dense<0.000000e+00> : vector<8xf32>
    %220 = vector.multi_reduction <add>, %219, %cst_43 [1] : vector<8x128xf32> to vector<8xf32>
    %221 = vector.shape_cast %220 : vector<8xf32> to vector<8x1xf32>
    %222 = vector.broadcast %14 : f32 to vector<8x1xf32>
    %223 = arith.addf %221, %222 : vector<8x1xf32>
    %cst_44 = arith.constant 0.000000e+00 : f32
    %224 = vector.shape_cast %218 : vector<1x12xi1> to vector<1x12xi1>
    %225 = vector.broadcast %224 : vector<1x12xi1> to vector<8x12xi1>
    %226 = vector.shape_cast %223 : vector<8x1xf32> to vector<8x1xf32>
    %227 = vector.broadcast %226 : vector<8x1xf32> to vector<8x12xf32>
    %228 = vector.broadcast %cst_44 : f32 to vector<8x12xf32>
    %229 = arith.select %225, %227, %228 : vector<8x12xi1>, vector<8x12xf32>
    %230 = arith.addf %212, %229 : vector<8x12xf32>
    %231 = arith.truncf %216 : vector<8x128xf32> to vector<8x128xbf16>
    %cst_45 = arith.constant dense<0.000000e+00> : vector<8x128xf32>
    %232 = tpu.matmul %231, %13, %cst_45 {dimension_numbers = #tpu.dot_dimension_numbers<[1], [0], [0], [1], [0, 0, 1, 1], [], []>} : vector<8x128xbf16>, vector<128x128xbf16>, vector<8x128xf32> -> vector<8x128xf32>
    %233 = arith.addf %232, %11 : vector<8x128xf32>
    %234 = math.tanh %233 : vector<8x128xf32>
    %c10_i32 = arith.constant 10 : i32
    %235 = vector.broadcast %c10_i32 : i32 to vector<1x12xi32>
    %236 = arith.cmpi eq, %15, %235 : vector<1x12xi32>
    %237 = arith.mulf %234, %8 : vector<8x128xf32>
    %cst_46 = arith.constant dense<0.000000e+00> : vector<8xf32>
    %238 = vector.multi_reduction <add>, %237, %cst_46 [1] : vector<8x128xf32> to vector<8xf32>
    %239 = vector.shape_cast %238 : vector<8xf32> to vector<8x1xf32>
    %240 = vector.broadcast %14 : f32 to vector<8x1xf32>
    %241 = arith.addf %239, %240 : vector<8x1xf32>
    %cst_47 = arith.constant 0.000000e+00 : f32
    %242 = vector.shape_cast %236 : vector<1x12xi1> to vector<1x12xi1>
    %243 = vector.broadcast %242 : vector<1x12xi1> to vector<8x12xi1>
    %244 = vector.shape_cast %241 : vector<8x1xf32> to vector<8x1xf32>
    %245 = vector.broadcast %244 : vector<8x1xf32> to vector<8x12xf32>
    %246 = vector.broadcast %cst_47 : f32 to vector<8x12xf32>
    %247 = arith.select %243, %245, %246 : vector<8x12xi1>, vector<8x12xf32>
    %248 = arith.addf %230, %247 : vector<8x12xf32>
    %249 = arith.truncf %234 : vector<8x128xf32> to vector<8x128xbf16>
    %cst_48 = arith.constant dense<0.000000e+00> : vector<8x128xf32>
    %250 = tpu.matmul %249, %13, %cst_48 {dimension_numbers = #tpu.dot_dimension_numbers<[1], [0], [0], [1], [0, 0, 1, 1], [], []>} : vector<8x128xbf16>, vector<128x128xbf16>, vector<8x128xf32> -> vector<8x128xf32>
    %251 = arith.addf %250, %11 : vector<8x128xf32>
    %252 = math.tanh %251 : vector<8x128xf32>
    %c11_i32 = arith.constant 11 : i32
    %253 = vector.broadcast %c11_i32 : i32 to vector<1x12xi32>
    %254 = arith.cmpi eq, %15, %253 : vector<1x12xi32>
    %255 = arith.mulf %252, %8 : vector<8x128xf32>
    %cst_49 = arith.constant dense<0.000000e+00> : vector<8xf32>
    %256 = vector.multi_reduction <add>, %255, %cst_49 [1] : vector<8x128xf32> to vector<8xf32>
    %257 = vector.shape_cast %256 : vector<8xf32> to vector<8x1xf32>
    %258 = vector.broadcast %14 : f32 to vector<8x1xf32>
    %259 = arith.addf %257, %258 : vector<8x1xf32>
    %cst_50 = arith.constant 0.000000e+00 : f32
    %260 = vector.shape_cast %254 : vector<1x12xi1> to vector<1x12xi1>
    %261 = vector.broadcast %260 : vector<1x12xi1> to vector<8x12xi1>
    %262 = vector.shape_cast %259 : vector<8x1xf32> to vector<8x1xf32>
    %263 = vector.broadcast %262 : vector<8x1xf32> to vector<8x12xf32>
    %264 = vector.broadcast %cst_50 : f32 to vector<8x12xf32>
    %265 = arith.select %261, %263, %264 : vector<8x12xi1>, vector<8x12xf32>
    %266 = arith.addf %248, %265 : vector<8x12xf32>
    %c0_51 = arith.constant 0 : index
    %c0_52 = arith.constant 0 : index
    %267 = vector.load %arg9[%c0_51, %c0_52] : memref<8x12xf32, #tpu.memory_space<vmem>>, vector<8x12xf32>
    tpu.vector_store %arg9[%c0_51, %c0_52], %266 {strides = array<i32>} : memref<8x12xf32, #tpu.memory_space<vmem>>, vector<8x12xf32>,
    return
  }
  func.func @transform_0(%arg0: i32) -> (i32, i32) {
    %c0_i32 = arith.constant 0 : i32
    %c0_i32_0 = arith.constant 0 : i32
    %c0_i32_1 = arith.constant 0 : i32
    return %c0_i32, %c0_i32_0 : i32, i32
  }
  func.func @transform_1(%arg0: i32) -> (i32, i32) {
    %c0_i32 = arith.constant 0 : i32
    %c0_i32_0 = arith.constant 0 : i32
    %c0_i32_1 = arith.constant 0 : i32
    return %c0_i32, %c0_i32_0 : i32, i32
  }
  func.func @transform_2(%arg0: i32) -> (i32, i32) {
    %c0_i32 = arith.constant 0 : i32
    %c0_i32_0 = arith.constant 0 : i32
    %c0_i32_1 = arith.constant 0 : i32
    return %c0_i32, %c0_i32_0 : i32, i32
  }
  func.func @transform_3(%arg0: i32) -> (i32, i32) {
    %c0_i32 = arith.constant 0 : i32
    %c0_i32_0 = arith.constant 0 : i32
    %c0_i32_1 = arith.constant 0 : i32
    return %c0_i32, %c0_i32_0 : i32, i32
  }
  func.func @transform_4(%arg0: i32) -> (i32, i32) {
    %c0_i32 = arith.constant 0 : i32
    %c0_i32_0 = arith.constant 0 : i32
    %c0_i32_1 = arith.constant 0 : i32
    return %c0_i32, %c0_i32_0 : i32, i32
  }
  func.func @transform_5(%arg0: i32) -> (i32, i32) {
    %c0_i32 = arith.constant 0 : i32
    %c0_i32_0 = arith.constant 0 : i32
    %c0_i32_1 = arith.constant 0 : i32
    return %c0_i32, %c0_i32_0 : i32, i32
  }
  func.func @transform_6(%arg0: i32) -> (i32, i32) {
    %c0_i32 = arith.constant 0 : i32
    %c0_i32_0 = arith.constant 0 : i32
    %c0_i32_1 = arith.constant 0 : i32
    return %c0_i32, %c0_i32_0 : i32, i32
  }
  func.func @transform_7(%arg0: i32) -> i32 {
    %c0_i32 = arith.constant 0 : i32
    %c0_i32_0 = arith.constant 0 : i32
    return %c0_i32 : i32
  }
  func.func @transform_8(%arg0: i32) -> (i32, i32) {
    %c0_i32 = arith.constant 0 : i32
    %c0_i32_0 = arith.constant 0 : i32
    %c0_i32_1 = arith.constant 0 : i32
    return %c0_i32, %c0_i32_0 : i32, i32
  }
}

</mosaic_0001>

<bundles_post_ra>
// kernel: rnn_predictor_forward.1
= control target key start
LH: loop header
LB: loop body
LE: loop exit
PB: predicated region body
PF: predicated region fallthrough
CT: control target
= control target key end

     0   :  { %14 = vsyncpa [#allocation4], 0  ;;  %s988_s0 = inlined_call_operand.hbm [shape: f32[8,8], index: 0, kind: input, shape index: {}]   ;;  %s989_s1 = inlined_call_operand.vmem [shape: f32[1,128], index: 1, kind: input, shape index: {}]   ;;  %s990_s2 = inlined_call_operand.vmem [shape: f32[1,128], index: 2, kind: input, shape index: {}]   ;;  %s991_s3 = inlined_call_operand.vmem [shape: f32[1,128], index: 3, kind: input, shape index: {}]   ;;  %s992_s4 = inlined_call_operand.hbm [shape: bf16[128,128], index: 4, kind: input, shape index: {}]   ;;  %s993_s5 = inlined_call_operand.hbm [shape: bf16[128,128], index: 5, kind: input, shape index: {}]   ;;  %s994_s6 = inlined_call_operand.hbm [shape: f32[1,128], index: 6, kind: input, shape index: {}]   ;;  %s995_s7 = inlined_call_operand.<no memory space> [shape: f32[1], index: 7, kind: input, shape index: {}]   ;;  %s996_s8 = inlined_call_operand.hbm [shape: f32[8,12], index: 8, kind: output, shape index: {}]  }
   0x1   :  { %15 = vsyncpa [#allocation7], 0 }
   0x2   :  { %16 = vsyncpa [#allocation10], 0  ;;  %s39_s29 = sshll.u32 %s992_s4, 4  ;;  %s40_s29 = int_to_ptr.hbm [resolvable:$true] %s39_s29 }
   0x3   :  { %17 = vsyncpa [#allocation5], 0  ;;  %s857_s30 = smov [#allocation6]   ;;  %s23_s12 = sshll.u32 %s988_s0, 4  ;;  %s24_s12 = int_to_ptr.hbm [resolvable:$true] %s23_s12 }
   0x4   :  { %s41_s9 = sshll.u32 %s857_s30, 4  ;;  %s858_s13 = smov 64   ;;  %s42_s9 = int_to_ptr.vmem [resolvable:$true] %s41_s9 }
   0x5   :  { %s859_s14 = smov 4   ;;  %s860_s15 = smov [#allocation3]  }
   0x6   :  { %47 = dma.hbm_to_vmem [thread:$0]  %s40_s29, 1024, %s42_s9, [#allocation7], %s858_s13, %s858_s13, %s859_s14  }
   0x7   :  { %s25_s16 = sshll.u32 %s860_s15, 4  ;;  %s52_s19 = sshll.u32 %s993_s5, 4  ;;  %s26_s16 = int_to_ptr.vmem [resolvable:$true] %s25_s16  ;;  %s53_s19 = int_to_ptr.hbm [resolvable:$true] %s52_s19 }
   0x8   :  { %28 = dma.hbm_to_vmem [thread:$0]  %s24_s12, 128, %s26_s16, [#allocation4]  }
   0x9   :  { %s66_s21 = sshll.u32 %s994_s6, 4  ;;  %s861_s22 = smov [#allocation8]   ;;  %s67_s21 = int_to_ptr.hbm [resolvable:$true] %s66_s21 }
   0xa   :  { %s54_s23 = sshll.u32 %s861_s22, 4  ;;  %s862_s0 = smov [#allocation9]   ;;  %s55_s23 = int_to_ptr.vmem [resolvable:$true] %s54_s23 }
   0xb   :  { %60 = dma.hbm_to_vmem [thread:$0]  %s53_s19, 1024, %s55_s23, [#allocation7], %s858_s13, %s858_s13, %s859_s14  }
   0xc   :  { %s68_s24 = sshll.u32 %s862_s0, 4  ;;  %s69_s24 = int_to_ptr.vmem [resolvable:$true] %s68_s24 }
   0xd   :  { %71 = dma.hbm_to_vmem [thread:$0]  %s67_s21, 16, %s69_s24, [#allocation10]  }
   0xe   :  { %849 = dma.done.wait [#allocation4], 128  }
   0xf   :  { %850 = vsyncadd [#allocation4], 4294967168 }
  0x10   :  { %851 = dma.done.wait [#allocation7], 2048  }
  0x11   :  { %852 = vsyncadd [#allocation7], 4294965248 }
  0x12   :  { %853 = dma.done.wait [#allocation10], 16  }
  0x13   :  { %854 = vsyncadd [#allocation10], 4294967280  ;;  %v863_v0 = vmov 0   ;;  %v668_v1 = vld [vmem:[#allocation6 + $0x38] sm:$0xff]  ;;  %v667_v2 = vld [vmem:[#allocation6 + $0x30] sm:$0xff]  ;;  %v864_v6 = vmov 1  }
  0x14   :  { %692 = vset.pattern.permute.xlu0 %v863_v0  ;;  %198 = vmatpush.bf16.msra.mxu0 %v668_v1  ;;  %v929_v3 = vld [vmem:[#allocation3] sm:$0xff]  ;;  %v666_v4 = vld [vmem:[#allocation6 + $0x28] sm:$0xff]  ;;  %v665_v5 = vld [vmem:[#allocation6 + $0x20] sm:$0xff]  ;;  %v865_v11 = vmov 2   ;;  %v866_v14 = vmov 3   ;;  %v867_v18 = vmov 6  }
  0x15   :  { %229 = vmatpush.bf16.msra.mxu1 %v668_v1  ;;  %145 = vperm.xlu0 %692, %v929_v3   ;;  %v664_v7 = vld [vmem:[#allocation6 + $0x18] sm:$0xff]  ;;  %v663_v8 = vld [vmem:[#allocation6 + $0x10] sm:$0xff]  ;;  %v662_v9 = vld [vmem:[#allocation6 + $0x8] sm:$0xff]  ;;  %v868_v26 = vmov 4   ;;  %v869_v27 = vmov 7   ;;  %v870_v28 = vmov 5  }
  0x16   :  { %259 = vmatpush.bf16.msra.mxu2 %v668_v1  ;;  %289 = vmatpush.bf16.msra.mxu3 %v668_v1  ;;  %v661_v10 = vld [vmem:[#allocation6] sm:$0xff]  ;;  %v937_v12 = vld [vmem:[%s989_s1] ss:$0 sm:$0xff]  ;;  %s585_s9 = sshll.u32 %s996_s8, 4  ;;  %vm576_vm12 = vcmask 97280   ;;  %s586_s9 = int_to_ptr.hbm [resolvable:$true] %s585_s9 }
  0x17   :  { %694 = vset.pattern.permute.xlu1 %v865_v11  ;;  %v944_v16 = vld [vmem:[%s990_s2] ss:$0 sm:$0xff]  ;;  %696 = vset.pattern.permute.xlu2 %v868_v26 }
  0x18   :  { %199 = vmatpush.bf16.msra.mxu0 %v667_v2  ;;  %253 = vperm.xlu1 %694, %v929_v3   ;;  %v951_v21 = vld [vmem:[%s991_s3] ss:$0 sm:$0xff] }
  0x19   :  { %230 = vmatpush.bf16.msra.mxu1 %v667_v2  ;;  %313 = vperm.xlu2 %696, %v929_v3   ;;  %v672_v26 = vld [vmem:[#allocation8 + $0x18] sm:$0xff] }
  0x1a   :  { %260 = vmatpush.bf16.msra.mxu2 %v667_v2  ;;  %290 = vmatpush.bf16.msra.mxu3 %v667_v2 }
  0x1c   :  { %200 = vmatpush.bf16.msra.mxu0 %v666_v4 }
  0x1d   :  { %231 = vmatpush.bf16.msra.mxu1 %v666_v4  ;;  %693 = vset.pattern.permute.xlu0 %v864_v6 }
  0x1e   :  { %261 = vmatpush.bf16.msra.mxu2 %v666_v4  ;;  %223 = vperm.xlu0 %693, %v929_v3  }
  0x1f   :  { %291 = vmatpush.bf16.msra.mxu3 %v666_v4 }
  0x20   :  { %201 = vmatpush.bf16.msra.mxu0 %v665_v5  ;;  %695 = vset.pattern.permute.xlu1 %v866_v14 }
  0x21   :  { %232 = vmatpush.bf16.msra.mxu1 %v665_v5  ;;  %283 = vperm.xlu1 %695, %v929_v3  }
  0x22   :  { %262 = vmatpush.bf16.msra.mxu2 %v665_v5  ;;  %697 = vset.pattern.permute.xlu2 %v870_v28  ;;  %v670_v28 = vld [vmem:[#allocation8 + $0x8] sm:$0xff] }
  0x23   :  { %292 = vmatpush.bf16.msra.mxu3 %v665_v5  ;;  %343 = vperm.xlu2 %697, %v929_v3  }
  0x24   :  { %202 = vmatpush.bf16.msra.mxu0 %v664_v7 }
  0x25   :  { %233 = vmatpush.bf16.msra.mxu1 %v664_v7 }
  0x26   :  { %263 = vmatpush.bf16.msra.mxu2 %v664_v7  ;;  %700 = vset.pattern.permute.xlu0 %v869_v27 }
  0x27   :  { %293 = vmatpush.bf16.msra.mxu3 %v664_v7 }
  0x28   :  { %203 = vmatpush.bf16.msra.mxu0 %v663_v8 }
  0x29   :  { %234 = vmatpush.bf16.msra.mxu1 %v663_v8  ;;  %698 = vset.pattern.permute.xlu1 %v867_v18 }
  0x2a   :  { %264 = vmatpush.bf16.msra.mxu2 %v663_v8  ;;  %373 = vperm.xlu1 %698, %v929_v3  }
  0x2b   :  { %294 = vmatpush.bf16.msra.mxu3 %v663_v8  ;;  %699 = vset.pattern.permute.xlu2 %v869_v27  ;;  %v671_v27 = vld [vmem:[#allocation8 + $0x10] sm:$0xff] }
  0x2c   :  { %204 = vmatpush.bf16.msra.mxu0 %v662_v9  ;;  %403 = vperm.xlu2 %699, %v929_v3  }
  0x2d   :  { %235 = vmatpush.bf16.msra.mxu1 %v662_v9 }
  0x2e   :  { %265 = vmatpush.bf16.msra.mxu2 %v662_v9 }
  0x2f   :  { %295 = vmatpush.bf16.msra.mxu3 %v662_v9 }
  0x30   :  { %205 = vmatpush.bf16.msra.mxu0 %v661_v10 }
  0x31   :  { %236 = vmatpush.bf16.msra.mxu1 %v661_v10 }
  0x32   :  { %266 = vmatpush.bf16.msra.mxu2 %v661_v10 }
  0x33   :  { %296 = vmatpush.bf16.msra.mxu3 %v661_v10  ;;  %206 = vmatmul.bf16.vlgmr.msra.gmra.mxu0 %v863_v0 }
  0x34   :  { %319 = vmatpush.bf16.msrb.mxu0 %v668_v1 }
  0x35   :  { %349 = vmatpush.bf16.msrb.mxu1 %v668_v1 }
  0x36   :  { %379 = vmatpush.bf16.msrb.mxu2 %v668_v1 }
  0x37   :  { %409 = vmatpush.bf16.msrb.mxu3 %v668_v1 }
  0x38   :  { %320 = vmatpush.bf16.msrb.mxu0 %v667_v2 }
  0x39   :  { %350 = vmatpush.bf16.msrb.mxu1 %v667_v2 }
  0x3a   :  { %380 = vmatpush.bf16.msrb.mxu2 %v667_v2 }
  0x3b   :  { %410 = vmatpush.bf16.msrb.mxu3 %v667_v2 }
  0x3c   :  { %321 = vmatpush.bf16.msrb.mxu0 %v666_v4 }
  0x3d   :  { %351 = vmatpush.bf16.msrb.mxu1 %v666_v4 }
  0x3e   :  { %381 = vmatpush.bf16.msrb.mxu2 %v666_v4 }
  0x3f   :  { %411 = vmatpush.bf16.msrb.mxu3 %v666_v4 }
  0x40   :  { %322 = vmatpush.bf16.msrb.mxu0 %v665_v5 }
  0x41   :  { %352 = vmatpush.bf16.msrb.mxu1 %v665_v5 }
  0x42   :  { %382 = vmatpush.bf16.msrb.mxu2 %v665_v5 }
  0x43   :  { %412 = vmatpush.bf16.msrb.mxu3 %v665_v5 }
  0x44   :  { %323 = vmatpush.bf16.msrb.mxu0 %v664_v7 }
  0x45   :  { %353 = vmatpush.bf16.msrb.mxu1 %v664_v7 }
  0x46   :  { %383 = vmatpush.bf16.msrb.mxu2 %v664_v7 }
  0x47   :  { %413 = vmatpush.bf16.msrb.mxu3 %v664_v7 }
  0x48   :  { %324 = vmatpush.bf16.msrb.mxu0 %v663_v8 }
  0x49   :  { %354 = vmatpush.bf16.msrb.mxu1 %v663_v8 }
  0x4a   :  { %384 = vmatpush.bf16.msrb.mxu2 %v663_v8 }
  0x4b   :  { %414 = vmatpush.bf16.msrb.mxu3 %v663_v8 }
  0x4c   :  { %325 = vmatpush.bf16.msrb.mxu0 %v662_v9 }
  0x4d   :  { %355 = vmatpush.bf16.msrb.mxu1 %v662_v9 }
  0x4e   :  { %385 = vmatpush.bf16.msrb.mxu2 %v662_v9 }
  0x4f   :  { %415 = vmatpush.bf16.msrb.mxu3 %v662_v9 }
  0x50   :  { %326 = vmatpush.bf16.msrb.mxu0 %v661_v10 }
  0x51   :  { %356 = vmatpush.bf16.msrb.mxu1 %v661_v10 }
  0x52   :  { %386 = vmatpush.bf16.msrb.mxu2 %v661_v10 }
  0x53   :  { %416 = vmatpush.bf16.msrb.mxu3 %v661_v10  ;;  %v676_v10 = vld [vmem:[#allocation8 + $0x38] sm:$0xff] }
  0x54   :  { %481 = vmatpush.bf16.msra.mxu0 %v676_v10 }
  0x73   :  { %v314_v56 = vpop.permute.xlu2 %313 }
  0x74   :  { %v316_v57 = vmul.f32 %v937_v12, %v314_v56 }
  0x76   :  { %v317_v58 = vadd.f32 %v944_v16, %v316_v57 }
  0x7d   :  { %v344_v1 = vpop.permute.xlu2 %343 }
  0x7e   :  { %v346_v2 = vmul.f32 %v937_v12, %v344_v1 }
  0x80   :  { %v347_v3 = vadd.f32 %v944_v16, %v346_v2 }
  0x87   :  { %v146_v13 = vpop.permute.xlu0 %145 }
  0x88   :  { %v148_v15 = vmul.f32 %v937_v12, %v146_v13 }
  0x8a   :  { %v149_v17 = vadd.f32 %v944_v16, %v148_v15  ;;  %v254_v38 = vpop.permute.xlu1 %253 }
  0x8b   :  { %v256_v39 = vmul.f32 %v937_v12, %v254_v38 }
  0x8d   :  { %v257_v40 = vadd.f32 %v944_v16, %v256_v39  ;;  %v704_v39 = vld [vmem:[#allocation9] ss:$0 sm:$0xff] }
  0x90   :  { %v224_v29 = vpop.permute.xlu0 %223 }
  0x91   :  { %v226_v30 = vmul.f32 %v937_v12, %v224_v29  ;;  %v669_v29 = vld [vmem:[#allocation8] sm:$0xff] }
  0x93   :  { %v227_v31 = vadd.f32 %v944_v16, %v226_v30  ;;  %v284_v47 = vpop.permute.xlu1 %283  ;;  %v404_v30 = vpop.permute.xlu2 %403 }
  0x94   :  { %v286_v48 = vmul.f32 %v937_v12, %v284_v47 }
  0x96   :  { %v287_v49 = vadd.f32 %v944_v16, %v286_v48 }
  0x9c   :  { %v374_v11 = vpop.permute.xlu1 %373 }
  0x9d   :  { %v376_v13 = vmul.f32 %v937_v12, %v374_v11 }
  0x9f   :  { %v377_v14 = vadd.f32 %v944_v16, %v376_v13 }
  0xb0   :  { %v207_v19 = vpop.f32.mrf.mxu0 }
  0xb1   :  { %v208_v20 = vadd.f32 %v207_v19, %v149_v17 }
  0xb3   :  { %705 = vtanh.f32 %v208_v20 }
  0xb8   :  { %v209_v22 = vpop.f32.mrf.mxu0 }
  0xb9   :  { %v706_v23 = vpop.eup %705 }
  0xba   :  { %v228_v24 = vpack.c.bf16 %v706_v23, %v706_v23  ;;  %v213_v25 = vmul.f32 %v706_v23, %v951_v21  ;;  %v675_v23 = vld [vmem:[#allocation8 + $0x30] sm:$0xff] }
  0xbb   :  { %482 = vmatpush.bf16.msra.mxu0 %v675_v23 }
  0xbc   :  { %237 = vmatmul.bf16.vlgmr.msra.gmra.mxu1 %v228_v24  ;;  %214 = vadd.xlane.f32.xlu0 %v213_v25  ;;  %v674_v24 = vld [vmem:[#allocation8 + $0x28] sm:$0xff]  ;;  %v673_v25 = vld [vmem:[#allocation8 + $0x20] sm:$0xff] }
  0xbd   :  { %505 = vmatpush.bf16.msra.mxu1 %v676_v10 }
  0xbf   :  { %483 = vmatpush.bf16.msra.mxu0 %v674_v24 }
  0xc1   :  { %506 = vmatpush.bf16.msra.mxu1 %v675_v23 }
  0xc3   :  { %484 = vmatpush.bf16.msra.mxu0 %v673_v25 }
  0xc5   :  { %507 = vmatpush.bf16.msra.mxu1 %v674_v24 }
  0xc7   :  { %485 = vmatpush.bf16.msra.mxu0 %v672_v26 }
  0xc9   :  { %508 = vmatpush.bf16.msra.mxu1 %v673_v25 }
  0xcb   :  { %486 = vmatpush.bf16.msra.mxu0 %v671_v27 }
  0xcd   :  { %509 = vmatpush.bf16.msra.mxu1 %v672_v26 }
  0xcf   :  { %487 = vmatpush.bf16.msra.mxu0 %v670_v28 }
  0xd1   :  { %510 = vmatpush.bf16.msra.mxu1 %v671_v27 }
  0xd3   :  { %488 = vmatpush.bf16.msra.mxu0 %v669_v29 }
  0xd5   :  { %511 = vmatpush.bf16.msra.mxu1 %v670_v28 }
  0xd9   :  { %512 = vmatpush.bf16.msra.mxu1 %v669_v29 }
 0x139   :  { %v238_v32 = vpop.f32.mrf.mxu1 }
 0x13a   :  { %v239_v33 = vadd.f32 %v238_v32, %v227_v31  ;;  %v406_v31 = vmul.f32 %v937_v12, %v404_v30 }
 0x13c   :  { %707 = vtanh.f32 %v239_v33  ;;  %v407_v32 = vadd.f32 %v944_v16, %v406_v31 }
 0x141   :  { %v240_v34 = vpop.f32.mrf.mxu1 }
 0x142   :  { %v708_v35 = vpop.eup %707 }
 0x143   :  { %v258_v36 = vpack.c.bf16 %v708_v35, %v708_v35  ;;  %v244_v37 = vmul.f32 %v708_v35, %v951_v21 }
 0x145   :  { %267 = vmatmul.bf16.vlgmr.msra.gmra.mxu2 %v258_v36  ;;  %245 = vadd.xlane.f32.xlu1 %v244_v37 }
 0x146   :  { %529 = vmatpush.bf16.msra.mxu2 %v676_v10 }
 0x14a   :  { %530 = vmatpush.bf16.msra.mxu2 %v675_v23 }
 0x14e   :  { %531 = vmatpush.bf16.msra.mxu2 %v674_v24 }
 0x152   :  { %532 = vmatpush.bf16.msra.mxu2 %v673_v25 }
 0x156   :  { %533 = vmatpush.bf16.msra.mxu2 %v672_v26 }
 0x15a   :  { %534 = vmatpush.bf16.msra.mxu2 %v671_v27 }
 0x15e   :  { %535 = vmatpush.bf16.msra.mxu2 %v670_v28 }
 0x162   :  { %536 = vmatpush.bf16.msra.mxu2 %v669_v29 }
 0x1c8   :  { %v268_v41 = vpop.f32.mrf.mxu2 }
 0x1c9   :  { %v269_v42 = vadd.f32 %v268_v41, %v257_v40 }
 0x1cb   :  { %709 = vtanh.f32 %v269_v42 }
 0x1d0   :  { %v270_v43 = vpop.f32.mrf.mxu2 }
 0x1d1   :  { %v710_v44 = vpop.eup %709 }
 0x1d2   :  { %v288_v45 = vpack.c.bf16 %v710_v44, %v710_v44  ;;  %v274_v46 = vmul.f32 %v710_v44, %v951_v21 }
 0x1d4   :  { %297 = vmatmul.bf16.vlgmr.msra.gmra.mxu3 %v288_v45  ;;  %275 = vadd.xlane.f32.xlu2 %v274_v46 }
 0x1d5   :  { %553 = vmatpush.bf16.msra.mxu3 %v676_v10 }
 0x1d9   :  { %554 = vmatpush.bf16.msra.mxu3 %v675_v23 }
 0x1dd   :  { %555 = vmatpush.bf16.msra.mxu3 %v674_v24 }
 0x1e1   :  { %556 = vmatpush.bf16.msra.mxu3 %v673_v25 }
 0x1e5   :  { %557 = vmatpush.bf16.msra.mxu3 %v672_v26 }
 0x1e9   :  { %558 = vmatpush.bf16.msra.mxu3 %v671_v27 }
 0x1ed   :  { %559 = vmatpush.bf16.msra.mxu3 %v670_v28 }
 0x1f1   :  { %560 = vmatpush.bf16.msra.mxu3 %v669_v29 }
 0x257   :  { %v298_v50 = vpop.f32.mrf.mxu3 }
 0x258   :  { %v299_v51 = vadd.f32 %v298_v50, %v287_v49 }
 0x25a   :  { %711 = vtanh.f32 %v299_v51 }
 0x25f   :  { %v300_v52 = vpop.f32.mrf.mxu3 }
 0x260   :  { %v712_v53 = vpop.eup %711 }
 0x261   :  { %v318_v54 = vpack.c.bf16 %v712_v53, %v712_v53  ;;  %v304_v55 = vmul.f32 %v712_v53, %v951_v21 }
 0x263   :  { %327 = vmatmul.bf16.vlgmr.msrb.gmra.mxu0 %v318_v54  ;;  %305 = vadd.xlane.f32.xlu2 %v304_v55 }
 0x2e0   :  { %v328_v59 = vpop.f32.mrf.mxu0 }
 0x2e1   :  { %v329_v60 = vadd.f32 %v328_v59, %v317_v58 }
 0x2e3   :  { %713 = vtanh.f32 %v329_v60 }
 0x2e8   :  { %v330_v61 = vpop.f32.mrf.mxu0 }
 0x2e9   :  { %v714_v62 = vpop.eup %713  ;;  %v276_v61 = vpop.xlane.xlu2 %275 }
 0x2ea   :  { %v348_v63 = vpack.c.bf16 %v714_v62, %v714_v62  ;;  %v334_v0 = vmul.f32 %v714_v62, %v951_v21  ;;  %v215_v62 = vpop.xlane.xlu0 %214 }
 0x2ec   :  { %357 = vmatmul.bf16.vlgmr.msrb.gmra.mxu1 %v348_v63  ;;  %335 = vadd.xlane.f32.xlu0 %v334_v0  ;;  %v140_v63 = vlaneseq  ;;  %v246_v0 = vpop.xlane.xlu1 %245 }
 0x2ee   :  { %v141_v2 = vand.u32 127, %v140_v63 }
 0x2f0   :  { %vm243_vm0 = vcmp.eq.s32.totalorder %v141_v2, 1  ;;  %vm212_vm1 = vcmp.eq.s32.totalorder %v141_v2, 0  ;;  %vm273_vm2 = vcmp.eq.s32.totalorder %v141_v2, 2  ;;  %vm303_vm3 = vcmp.eq.s32.totalorder %v141_v2, 3 }
 0x2f1   :  { %v306_v1 = vpop.xlane.xlu2 %305  ;;  %vm333_vm4 = vcmp.eq.s32.totalorder %v141_v2, 4  ;;  %vm363_vm5 = vcmp.eq.s32.totalorder %v141_v2, 5  ;;  %vm393_vm6 = vcmp.eq.s32.totalorder %v141_v2, 6  ;;  %vm423_vm7 = vcmp.eq.s32.totalorder %v141_v2, 7 }
 0x2f2   :  { %vm495_vm8 = vcmp.eq.s32.totalorder %v141_v2, 8  ;;  %vm519_vm9 = vcmp.eq.s32.totalorder %v141_v2, 9  ;;  %vm543_vm10 = vcmp.eq.s32.totalorder %v141_v2, 10  ;;  %vm567_vm11 = vcmp.eq.s32.totalorder %v141_v2, 11 }
 0x369   :  { %v358_v4 = vpop.f32.mrf.mxu1 }
 0x36a   :  { %v359_v5 = vadd.f32 %v358_v4, %v347_v3  ;;  %v216_v3 = vstv %s995_s7  ;;  %v336_v4 = vpop.xlane.xlu0 %335  ;;  %s871_s7 = smov [#allocation11]  }
 0x36b   :  { %s583_s28 = sshll.u32 %s871_s7, 4  ;;  %s584_s28 = int_to_ptr.vmem [resolvable:$true] %s583_s28 }
 0x36c   :  { %715 = vtanh.f32 %v359_v5  ;;  %v247_v5 = vadd.f32 %v246_v0, %v216_v3 }
 0x371   :  { %v360_v6 = vpop.f32.mrf.mxu1 }
 0x372   :  { %v716_v7 = vpop.eup %715  ;;  %v217_v6 = vadd.f32 %v216_v3, %v215_v62 }
 0x373   :  { %v378_v8 = vpack.c.bf16 %v716_v7, %v716_v7  ;;  %v364_v9 = vmul.f32 %v716_v7, %v951_v21  ;;  %v277_v7 = vadd.f32 %v276_v61, %v216_v3 }
 0x374   :  { %v220_v11 = vsel %vm212_vm1, %v217_v6, 0.0 }
 0x375   :  { %387 = vmatmul.bf16.vlgmr.msrb.gmra.mxu2 %v378_v8  ;;  %365 = vadd.xlane.f32.xlu1 %v364_v9  ;;  %v307_v9 = vadd.f32 %v306_v1, %v216_v3  ;;  %v280_v13 = vsel %vm273_vm2, %v277_v7, 0.0 }
 0x3e8   :  { %v366_v8 = vpop.xlane.xlu1 %365 }
 0x3f8   :  { %v388_v15 = vpop.f32.mrf.mxu2 }
 0x3f9   :  { %v389_v17 = vadd.f32 %v388_v15, %v377_v14  ;;  %v337_v14 = vadd.f32 %v336_v4, %v216_v3 }
 0x3fb   :  { %717 = vtanh.f32 %v389_v17 }
 0x400   :  { %v390_v18 = vpop.f32.mrf.mxu2 }
 0x401   :  { %v718_v19 = vpop.eup %717  ;;  %v310_v18 = vsel %vm303_vm3, %v307_v9, 0.0 }
 0x402   :  { %v408_v20 = vpack.c.bf16 %v718_v19, %v718_v19  ;;  %v394_v22 = vmul.f32 %v718_v19, %v951_v21  ;;  %v367_v19 = vadd.f32 %v366_v8, %v216_v3 }
 0x404   :  { %417 = vmatmul.bf16.vlgmr.msrb.gmra.mxu3 %v408_v20  ;;  %395 = vadd.xlane.f32.xlu2 %v394_v22  ;;  %v340_v22 = vsel %vm333_vm4, %v337_v14, 0.0  ;;  %v370_v26 = vsel %vm363_vm5, %v367_v19, 0.0 }
 0x477   :  { %v396_v10 = vpop.xlane.xlu2 %395 }
 0x478   :  { %v397_v23 = vadd.f32 %v396_v10, %v216_v3 }
 0x47a   :  { %v400_v30 = vsel %vm393_vm6, %v397_v23, 0.0 }
 0x487   :  { %v418_v33 = vpop.f32.mrf.mxu3 }
 0x488   :  { %v419_v34 = vadd.f32 %v418_v33, %v407_v32 }
 0x48a   :  { %719 = vtanh.f32 %v419_v34 }
 0x48f   :  { %v420_v35 = vpop.f32.mrf.mxu3 }
 0x490   :  { %v720_v36 = vpop.eup %719 }
 0x491   :  { %v432_v37 = vpack.c.bf16 %v720_v36, %v720_v36  ;;  %v424_v38 = vmul.f32 %v720_v36, %v951_v21 }
 0x493   :  { %489 = vmatmul.bf16.vlgmr.msra.gmra.mxu0 %v432_v37  ;;  %425 = vadd.xlane.f32.xlu0 %v424_v38 }
 0x506   :  { %v426_v17 = vpop.xlane.xlu0 %425 }
 0x507   :  { %v427_v27 = vadd.f32 %v426_v17, %v216_v3 }
 0x509   :  { %v430_v34 = vsel %vm423_vm7, %v427_v27, 0.0 }
 0x510   :  { %v490_v40 = vpop.f32.mrf.mxu0 }
 0x511   :  { %v491_v41 = vadd.f32 %v704_v39, %v490_v40 }
 0x513   :  { %721 = vtanh.f32 %v491_v41 }
 0x518   :  { %v492_v42 = vpop.f32.mrf.mxu0 }
 0x519   :  { %v722_v43 = vpop.eup %721 }
 0x51a   :  { %v504_v44 = vpack.c.bf16 %v722_v43, %v722_v43  ;;  %v496_v12 = vmul.f32 %v722_v43, %v951_v21 }
 0x51c   :  { %513 = vmatmul.bf16.vlgmr.msra.gmra.mxu1 %v504_v44  ;;  %497 = vadd.xlane.f32.xlu1 %v496_v12 }
 0x58f   :  { %v498_v25 = vpop.xlane.xlu1 %497 }
 0x590   :  { %v499_v31 = vadd.f32 %v498_v25, %v216_v3 }
 0x592   :  { %v502_v37 = vsel %vm495_vm8, %v499_v31, 0.0 }
 0x599   :  { %v514_v16 = vpop.f32.mrf.mxu1 }
 0x59a   :  { %v515_v45 = vadd.f32 %v704_v39, %v514_v16 }
 0x59c   :  { %723 = vtanh.f32 %v515_v45 }
 0x5a1   :  { %v516_v46 = vpop.f32.mrf.mxu1 }
 0x5a2   :  { %v724_v47 = vpop.eup %723 }
 0x5a3   :  { %v528_v48 = vpack.c.bf16 %v724_v47, %v724_v47  ;;  %v520_v49 = vmul.f32 %v724_v47, %v951_v21 }
 0x5a5   :  { %537 = vmatmul.bf16.vlgmr.msra.gmra.mxu2 %v528_v48  ;;  %521 = vadd.xlane.f32.xlu2 %v520_v49 }
 0x618   :  { %v522_v29 = vpop.xlane.xlu2 %521 }
 0x619   :  { %v523_v35 = vadd.f32 %v522_v29, %v216_v3 }
 0x61b   :  { %v526_v40 = vsel %vm519_vm9, %v523_v35, 0.0 }
 0x628   :  { %v538_v50 = vpop.f32.mrf.mxu2 }
 0x629   :  { %v539_v51 = vadd.f32 %v704_v39, %v538_v50 }
 0x62b   :  { %725 = vtanh.f32 %v539_v51 }
 0x630   :  { %v540_v52 = vpop.f32.mrf.mxu2 }
 0x631   :  { %v726_v53 = vpop.eup %725 }
 0x632   :  { %v552_v54 = vpack.c.bf16 %v726_v53, %v726_v53  ;;  %v544_v55 = vmul.f32 %v726_v53, %v951_v21 }
 0x634   :  { %561 = vmatmul.bf16.vlgmr.msra.gmra.mxu3 %v552_v54  ;;  %545 = vadd.xlane.f32.xlu0 %v544_v55 }
 0x6a7   :  { %v546_v33 = vpop.xlane.xlu0 %545 }
 0x6a8   :  { %v547_v38 = vadd.f32 %v546_v33, %v216_v3 }
 0x6aa   :  { %v550_v42 = vsel %vm543_vm10, %v547_v38, 0.0 }
 0x6b7   :  { %v562_v56 = vpop.f32.mrf.mxu3 }
 0x6b8   :  { %v563_v57 = vadd.f32 %v704_v39, %v562_v56 }
 0x6ba   :  { %727 = vtanh.f32 %v563_v57 }
 0x6bf   :  { %v564_v58 = vpop.f32.mrf.mxu3 }
 0x6c0   :  { %v728_v59 = vpop.eup %727 }
 0x6c1   :  { %v568_v60 = vmul.f32 %v728_v59, %v951_v21  ;;  %v250_v21 = vsel %vm243_vm0, %v247_v5, 0.0 }
 0x6c2   :  { %v251_v15 = vadd.f32 %v250_v21, %v220_v11 }
 0x6c3   :  { %569 = vadd.xlane.f32.xlu1 %v568_v60 }
 0x6c4   :  { %v281_v20 = vadd.f32 %v280_v13, %v251_v15 }
 0x6c6   :  { %v311_v24 = vadd.f32 %v310_v18, %v281_v20 }
 0x6c8   :  { %v341_v28 = vadd.f32 %v340_v22, %v311_v24 }
 0x6ca   :  { %v371_v32 = vadd.f32 %v370_v26, %v341_v28 }
 0x6cc   :  { %v401_v36 = vadd.f32 %v400_v30, %v371_v32 }
 0x6ce   :  { %v431_v39 = vadd.f32 %v430_v34, %v401_v36 }
 0x6d0   :  { %v503_v41 = vadd.f32 %v502_v37, %v431_v39 }
 0x6d2   :  { %v527_v43 = vadd.f32 %v526_v40, %v503_v41 }
 0x6d4   :  { %v551_v16 = vadd.f32 %v550_v42, %v527_v43 }
 0x736   :  { %v570_v44 = vpop.xlane.xlu1 %569 }
 0x737   :  { %v571_v12 = vadd.f32 %v570_v44, %v216_v3 }
 0x739   :  { %v574_v45 = vsel %vm567_vm11, %v571_v12, 0.0 }
 0x73a   :  { %v575_v46 = vadd.f32 %v574_v45, %v551_v16 }
 0x73c   :  { %577 = vst.msk [vmem:[#allocation11] sm:$0xff] %vm576_vm12, %v575_v46 }
 0x73d   :  { %588 = dma.vmem_to_hbm [thread:$0]  %s584_s28, 128, %s586_s9, [#allocation5]  }
 0x73e   :  { %855 = dma.done.wait [#allocation5], 128  }
 0x73f   :  { %856 = vsyncadd [#allocation5], 4294967168 }
 0x740   :  { %593 = vsyncpa [#allocation4], 1 }
 0x741   :  { %594 = vsyncpa [#allocation7], 1 }
 0x742   :  { %595 = vsyncpa [#allocation10], 1 }
 0x743   :  { %596 = vsyncpa [#allocation5], 1 }

</bundles_post_ra>
